<compile_context>
chip_gen: v7x
topology: tpu7x:2x2x1
jax: 0.10.0
libtpu: 0.0.40
codegen_flags: <defaults>
</compile_context>

<pallas_src>
import math

import jax
import jax.numpy as jnp
from jax.experimental import pallas as pl
from jax.experimental.pallas import tpu as pltpu


# ---------------------------------------------------------------------------
# Kernels (specialized: fusion mode x out_from).
# ---------------------------------------------------------------------------
def _gate_full_kernel(a_ref, b_ref, w_ref, bias_ref, out_ref):
    fusion = a_ref[...] * b_ref[...]                       # f32 elementwise (VPU)
    acc = jnp.dot(fusion.astype(w_ref.dtype), w_ref[...],
                  preferred_element_type=jnp.float32)      # MXU, f32 accumulate
    out_ref[...] = (acc + bias_ref[...]).astype(out_ref.dtype)


def _gate_fusion_kernel(a_ref, b_ref, fus_ref):
    # out_from='fusion': no matmul, no weight traffic, no 'out' writeback
    fus_ref[...] = (a_ref[...] * b_ref[...]).astype(fus_ref.dtype)


def _cat_full_kernel(a_ref, b_ref, wa_ref, ba_ref, wb_ref, bb_ref,
                     wtop_ref, wbot_ref, bias_ref, out_ref):
    cdt = wa_ref.dtype
    la = jnp.dot(a_ref[...].astype(cdt), wa_ref[...],
                 preferred_element_type=jnp.float32) + ba_ref[...]
    lb = jnp.dot(b_ref[...].astype(cdt), wb_ref[...],
                 preferred_element_type=jnp.float32) + bb_ref[...]
    # concat-free: the final matmul's K reduction is split over the two halves
    acc = jnp.dot(la.astype(wtop_ref.dtype), wtop_ref[...],
                  preferred_element_type=jnp.float32)
    acc = acc + jnp.dot(lb.astype(wbot_ref.dtype), wbot_ref[...],
                        preferred_element_type=jnp.float32)
    # TODO(synk): on v5e, if the bundle dump shows the VALU slot binding before
    # the MXU, fold the bias into an accumulator init / cast la,lb once into
    # VMEM scratch to thin the elementwise epilogue.
    out_ref[...] = (acc + bias_ref[...]).astype(out_ref.dtype)


def _make_cat_fusion_kernel(half, lane_aligned):
    def kernel(a_ref, b_ref, wa_ref, ba_ref, wb_ref, bb_ref, fus_ref):
        cdt = wa_ref.dtype
        la = jnp.dot(a_ref[...].astype(cdt), wa_ref[...],
                     preferred_element_type=jnp.float32) + ba_ref[...]
        lb = jnp.dot(b_ref[...].astype(cdt), wb_ref[...],
                     preferred_element_type=jnp.float32) + bb_ref[...]
        if lane_aligned:
            # half % 128 == 0: both slice stores start on a lane boundary
            fus_ref[:, :half] = la.astype(fus_ref.dtype)
            fus_ref[:, half:] = lb.astype(fus_ref.dtype)
        else:
            # unaligned half: one dense full-block store instead of two
            # masked / cross-lane-shuffled partial stores
            fus_ref[...] = jnp.concatenate([la, lb], axis=1).astype(fus_ref.dtype)
    return kernel


# ---------------------------------------------------------------------------
# Small helpers
# ---------------------------------------------------------------------------
def _round_up(x, m):
    return (x + m - 1) // m * m


def _vmem_budget():
    # Generation-aware VMEM cap (per TensorCore) with headroom for Pallas's own
    # pipeline buffers / internal scratch:
    #   v7x  (64 MiB physical)  -> ~52 MiB
    #   v5e/v6e (128 MiB)       -> ~108 MiB
    try:
        phys = int(pltpu.get_tpu_info().vmem_capacity_bytes)
    except Exception:
        phys = 64 << 20          # conservative fallback (v7x per-core VMEM)
    return max(32 << 20, min(phys - (12 << 20), (phys * 85) // 100))


def _choose_tb(B):
    # Megacore-aware: aim for >= 4 grid steps so both v7x TensorCores get work
    # and the double-buffered pipeline has something to overlap; 256-aligned
    # tiles when large (MXU M width on v6e/v7x), multiple of 8 otherwise.
    if B <= 8:
        return B                              # single block == full batch dim
    tb = min(512, _round_up(pl.cdiv(B, 4), 8))
    if tb >= 256:
        tb = (tb // 256) * 256
    return min(tb, _round_up(B, 8))


def _fit_tb(tb, est_fn, budget):
    # Shrink the batch tile until the honest VMEM estimate fits the budget.
    while tb > 8 and est_fn(tb) > budget:
        tb = max(8, _round_up(tb // 2, 8))
    return tb


def _row_spec(tb, ncols):
    # batch-tiled operand (works for 1-D and 2-D grids)
    return pl.BlockSpec((tb, ncols), lambda i, *_: (i, 0))


def _resident_spec(shape):
    # Grid-invariant operand: single-buffered (no pipelining benefit; halves
    # its VMEM footprint, which matters most on v7x's 64 MiB VMEM).
    idx = lambda *_: (0,) * len(shape)
    try:
        return pl.BlockSpec(shape, idx, pipeline_mode=pl.Buffered(1))
    except TypeError:                         # jax without pipeline_mode kwarg
        return pl.BlockSpec(shape, idx)


def _compiler_params(est_bytes, budget, grid_rank):
    vmem = int(min(budget, max(32 << 20, est_bytes + (8 << 20))))
    return pltpu.CompilerParams(dimension_semantics=("parallel",) * grid_rank,
                                vmem_limit_bytes=vmem)


# ---------------------------------------------------------------------------
# Parameter construction (deterministic, mimics nn.Linear uniform init).
# Weights are stored pre-transposed ([in, out]) and pre-cast ONCE to the MXU
# compute dtype; biases stay f32 [1, out] (added in the f32 epilogue).
# ---------------------------------------------------------------------------
def _init_linear(key, in_f, out_f, compute_dtype):
    kw, kb = jax.random.split(key)
    bound = 1.0 / math.sqrt(in_f)
    w = jax.random.uniform(kw, (out_f, in_f), jnp.float32, -bound, bound)
    b = jax.random.uniform(kb, (out_f,), jnp.float32, -bound, bound)
    return w.T.astype(compute_dtype), b.reshape(1, out_f)


def init_gating_pln_params(key, in_dim, out_dim, fusion,
                           compute_dtype=jnp.float32):
    if fusion == 'gate':
        w_t, b = _init_linear(key, in_dim, out_dim, compute_dtype)
        return {'linear': (w_t, b)}
    elif fusion == 'cat':
        k0, k1, k2 = jax.random.split(key, 3)
        half = in_dim // 2
        wa_t, ba = _init_linear(k0, in_dim, half, compute_dtype)
        wb_t, bb = _init_linear(k1, in_dim, half, compute_dtype)
        w_t, b = _init_linear(k2, 2 * half, out_dim, compute_dtype)
        # final weight pre-split along K (rows of w_t) -> concat-free kernel
        return {'linear_a': (wa_t, ba),
                'linear_b': (wb_t, bb),
                'linear': (w_t[:half], w_t[half:], b)}
    raise ValueError('Invalid value of argument')


# ---------------------------------------------------------------------------
# Forward pass
# ---------------------------------------------------------------------------
def gating_pln_forward(params, input_a, input_b, fusion, out_from='full',
                       out_dtype=jnp.float32, tb=None):
    if out_from not in ('full', 'fusion'):
        raise ValueError('Invalid value of argument')

    B, in_dim = input_a.shape
    budget = _vmem_budget()
    out_dt = jnp.dtype(out_dtype)
    o_isz = out_dt.itemsize

    if fusion == 'gate':
        w_t, bias = params['linear']             # [in, out] compute dtype, [1, out] f32
        out_dim = w_t.shape[1]
        w_isz = jnp.dtype(w_t.dtype).itemsize

        if out_from == 'fusion':
            def est(t):
                return (2 * 2 * t * in_dim * 4           # a, b double-buffered
                        + 2 * t * in_dim * o_isz         # out double-buffered
                        + t * in_dim * 4)                # f32 product temp
            tb_ = tb if tb is not None else _fit_tb(_choose_tb(B), est, budget)
            grid = (pl.cdiv(B, tb_),)
            cost = pl.CostEstimate(flops=B * in_dim, transcendentals=0,
                                   bytes_accessed=B * in_dim * (8 + o_isz))
            return pl.pallas_call(
                _gate_fusion_kernel,
                out_shape=jax.ShapeDtypeStruct((B, in_dim), out_dt),
                grid=grid,
                in_specs=[_row_spec(tb_, in_dim), _row_spec(tb_, in_dim)],
                out_specs=_row_spec(tb_, in_dim),
                compiler_params=_compiler_params(est(tb_), budget, 1),
                cost_estimate=cost,
            )(input_a, input_b)

        # out_from == 'full' : optional N grid axis so huge weights need not be
        # fully VMEM-resident (also more parallel steps for v7x's two cores).
        tn = out_dim if out_dim <= 1024 else 512
        nn = pl.cdiv(out_dim, tn)
        wbuf = 1 if nn == 1 else 2               # resident vs pipelined weight panel

        def est(t):
            return (2 * 2 * t * in_dim * 4                    # a, b double-buffered
                    + wbuf * in_dim * tn * w_isz              # weight panel
                    + wbuf * 8 * _round_up(tn, 128) * 4       # bias (tile-padded)
                    + 2 * t * tn * o_isz                      # out double-buffered
                    + t * in_dim * (4 + w_isz)                # f32 product + cast copy
                    + t * tn * 4)                             # f32 accumulator
        tb_ = tb if tb is not None else _fit_tb(_choose_tb(B), est, budget)
        grid = (pl.cdiv(B, tb_), nn)
        w_spec = (_resident_spec((in_dim, tn)) if nn == 1
                  else pl.BlockSpec((in_dim, tn), lambda i, j: (0, j)))
        b_spec = (_resident_spec((1, tn)) if nn == 1
                  else pl.BlockSpec((1, tn), lambda i, j: (0, j)))
        cost = pl.CostEstimate(
            flops=2 * B * in_dim * out_dim + B * in_dim, transcendentals=0,
            bytes_accessed=(2 * B * in_dim * 4 + B * out_dim * o_isz
                            + in_dim * out_dim * w_isz + out_dim * 4))
        return pl.pallas_call(
            _gate_full_kernel,
            out_shape=jax.ShapeDtypeStruct((B, out_dim), out_dt),
            grid=grid,
            in_specs=[_row_spec(tb_, in_dim), _row_spec(tb_, in_dim),
                      w_spec, b_spec],
            out_specs=pl.BlockSpec((tb_, tn), lambda i, j: (i, j)),
            compiler_params=_compiler_params(est(tb_), budget, 2),
            cost_estimate=cost,
        )(input_a, input_b, w_t, bias)

    if fusion == 'cat':
        wa_t, ba = params['linear_a']            # [in, half], [1, half]
        wb_t, bb = params['linear_b']
        w_top, w_bot, bias = params['linear']    # [half, out] x2, [1, out]
        half = wa_t.shape[1]
        out_dim = w_top.shape[1]
        w_isz = jnp.dtype(wa_t.dtype).itemsize

        if out_from == 'fusion':
            lane_aligned = (half % 128 == 0)

            def est(t):
                return (2 * 2 * t * in_dim * 4                 # a, b double-buffered
                        + 2 * in_dim * half * w_isz            # wa, wb resident (1 buf)
                        + 2 * 8 * _round_up(half, 128) * 4     # ba, bb resident
                        + 2 * t * 2 * half * o_isz             # out double-buffered
                        + 2 * t * in_dim * w_isz               # a/b cast copies
                        + 2 * t * half * 4                     # la, lb f32
                        + t * 2 * half * 4)                    # concat temp
            tb_ = tb if tb is not None else _fit_tb(_choose_tb(B), est, budget)
            grid = (pl.cdiv(B, tb_),)
            cost = pl.CostEstimate(
                flops=4 * B * in_dim * half, transcendentals=0,
                bytes_accessed=(2 * B * in_dim * 4 + B * 2 * half * o_isz
                                + 2 * in_dim * half * w_isz + 2 * half * 4))
            return pl.pallas_call(
                _make_cat_fusion_kernel(half, lane_aligned),
                out_shape=jax.ShapeDtypeStruct((B, 2 * half), out_dt),
                grid=grid,
                in_specs=[_row_spec(tb_, in_dim), _row_spec(tb_, in_dim),
                          _resident_spec((in_dim, half)), _resident_spec((1, half)),
                          _resident_spec((in_dim, half)), _resident_spec((1, half))],
                out_specs=_row_spec(tb_, 2 * half),
                compiler_params=_compiler_params(est(tb_), budget, 1),
                cost_estimate=cost,
            )(input_a, input_b, wa_t, ba, wb_t, bb)

        # out_from == 'full'
        # TODO(synk): for very large out_dim, add an N grid axis over
        # w_top/w_bot/bias (with la/lb cached in VMEM scratch) instead of
        # keeping the full final weight resident.
        def est(t):
            return (2 * 2 * t * in_dim * 4                     # a, b double-buffered
                    + 2 * in_dim * half * w_isz                # wa, wb resident
                    + 2 * half * out_dim * w_isz               # w_top, w_bot resident
                    + 2 * 8 * _round_up(half, 128) * 4         # ba, bb
                    + 8 * _round_up(out_dim, 128) * 4          # bias
                    + 2 * t * out_dim * o_isz                  # out double-buffered
                    + 2 * t * in_dim * w_isz                   # a/b cast copies
                    + 2 * t * half * (4 + w_isz)               # la, lb f32 + casts
                    + t * out_dim * 4)                         # f32 accumulator
        tb_ = tb if tb is not None else _fit_tb(_choose_tb(B), est, budget)
        grid = (pl.cdiv(B, tb_),)
        cost = pl.CostEstimate(
            flops=4 * B * in_dim * half + 4 * B * half * out_dim,
            transcendentals=0,
            bytes_accessed=(2 * B * in_dim * 4 + B * out_dim * o_isz
                            + 2 * in_dim * half * w_isz
                            + 2 * half * out_dim * w_isz
                            + (2 * half + out_dim) * 4))
        return pl.pallas_call(
            _cat_full_kernel,
            out_shape=jax.ShapeDtypeStruct((B, out_dim), out_dt),
            grid=grid,
            in_specs=[_row_spec(tb_, in_dim), _row_spec(tb_, in_dim),
                      _resident_spec((in_dim, half)), _resident_spec((1, half)),
                      _resident_spec((in_dim, half)), _resident_spec((1, half)),
                      _resident_spec((half, out_dim)),
                      _resident_spec((half, out_dim)),
                      _resident_spec((1, out_dim))],
            out_specs=_row_spec(tb_, out_dim),
            compiler_params=_compiler_params(est(tb_), budget, 1),
            cost_estimate=cost,
        )(input_a, input_b, wa_t, ba, wb_t, bb, w_top, w_bot, bias)

    raise ValueError('Invalid value of argument')


# ---------------------------------------------------------------------------
# Pure-JAX reference for validation
# ---------------------------------------------------------------------------
def gating_pln_ref(params, a, b, fusion, out_from='full'):
    f32 = lambda x: x.astype(jnp.float32)
    if fusion == 'gate':
        w_t, bias = params['linear']
        fus = a * b
        out = fus @ f32(w_t) + bias
    elif fusion == 'cat':
        wa_t, ba = params['linear_a']
        wb_t, bb = params['linear_b']
        w_top, w_bot, bias = params['linear']
        fus = jnp.concatenate([a @ f32(wa_t) + ba, b @ f32(wb_t) + bb], axis=1)
        out = fus @ jnp.concatenate([f32(w_top), f32(w_bot)], axis=0) + bias
    else:
        raise ValueError('Invalid value of argument')
    return fus if out_from == 'fusion' else out


if __name__ == "__main__":
    key = jax.random.PRNGKey(0)
    k_a, k_b, k_pg, k_pc = jax.random.split(key, 4)

    B, in_dim, out_dim = 8, 32, 16
    input_a = jax.random.normal(k_a, (B, in_dim), jnp.float32)
    input_b = jax.random.normal(k_b, (B, in_dim), jnp.float32)

    ok = True
    for fusion_mode, pkey in (('gate', k_pg), ('cat', k_pc)):
        params32 = init_gating_pln_params(pkey, in_dim, out_dim, fusion_mode,
                                          compute_dtype=jnp.float32)
        params16 = init_gating_pln_params(pkey, in_dim, out_dim, fusion_mode,
                                          compute_dtype=jnp.bfloat16)
        for out_from in ('full', 'fusion'):
            # f32 MXU operands: strict check
            want = gating_pln_ref(params32, input_a, input_b, fusion_mode, out_from)
            got = jax.block_until_ready(
                gating_pln_forward(params32, input_a, input_b, fusion_mode, out_from))
            ok &= bool(jnp.allclose(got, want, atol=1e-5, rtol=1e-5))
            # bf16 MXU operands (pre-cast at init), f32 accumulation: looser check
            want16 = gating_pln_ref(params16, input_a, input_b, fusion_mode, out_from)
            got16 = jax.block_until_ready(
                gating_pln_forward(params16, input_a, input_b, fusion_mode, out_from))
            ok &= bool(jnp.allclose(got16, want16, atol=5e-2, rtol=5e-2))

    # Ragged batch (B not a multiple of the tile): exercises the Pallas
    # edge-block masking that replaced the explicit pad / output slice.
    Br = 11
    a_r = jax.random.normal(jax.random.PRNGKey(1), (Br, in_dim), jnp.float32)
    b_r = jax.random.normal(jax.random.PRNGKey(2), (Br, in_dim), jnp.float32)
    for fusion_mode, pkey in (('gate', k_pg), ('cat', k_pc)):
        params32 = init_gating_pln_params(pkey, in_dim, out_dim, fusion_mode)
        for out_from in ('full', 'fusion'):
            want = gating_pln_ref(params32, a_r, b_r, fusion_mode, out_from)
            got = jax.block_until_ready(
                gating_pln_forward(params32, a_r, b_r, fusion_mode, out_from))
            ok &= bool(jnp.allclose(got, want, atol=1e-5, rtol=1e-5))

    print("KERNEL_OK" if ok else "MISMATCH")
</pallas_src>

<mosaic_0001>
module attributes {stable_mosaic.version = 11 : i64} {
  func.func @_gate_full_kernel(%arg0: i32, %arg1: i32, %arg2: memref<8x32xf32, #tpu.memory_space<vmem>>, %arg3: memref<8x32xf32, #tpu.memory_space<vmem>>, %arg4: memref<32x16xf32, #tpu.memory_space<vmem>>, %arg5: memref<1x16xf32, #tpu.memory_space<vmem>>, %arg6: memref<8x16xf32, #tpu.memory_space<vmem>>) attributes {dimension_semantics = [#tpu.dimension_semantics<parallel>, #tpu.dimension_semantics<parallel>], iteration_bounds = array<i64: 1, 1>, scalar_prefetch = 0 : i64, scratch_operands = 0 : i64, tpu.core_type = #tpu.core_type<tc>, window_params = [{transform_indices = @transform_0, window_bounds = array<i64: 8, 32>}, {transform_indices = @transform_1, window_bounds = array<i64: 8, 32>}, {pipeline_mode = #tpu.pipeline_mode<synchronous>, transform_indices = @transform_2, window_bounds = array<i64: 32, 16>}, {pipeline_mode = #tpu.pipeline_mode<synchronous>, transform_indices = @transform_3, window_bounds = array<i64: 1, 16>}, {transform_indices = @transform_4, window_bounds = array<i64: 8, 16>}]} {
    %c0 = arith.constant 0 : index
    %c0_0 = arith.constant 0 : index
    %0 = vector.load %arg2[%c0, %c0_0] : memref<8x32xf32, #tpu.memory_space<vmem>>, vector<8x32xf32>
    %c0_1 = arith.constant 0 : index
    %c0_2 = arith.constant 0 : index
    %1 = vector.load %arg3[%c0_1, %c0_2] : memref<8x32xf32, #tpu.memory_space<vmem>>, vector<8x32xf32>
    %2 = arith.mulf %0, %1 : vector<8x32xf32>
    %c0_3 = arith.constant 0 : index
    %c0_4 = arith.constant 0 : index
    %3 = vector.load %arg4[%c0_3, %c0_4] : memref<32x16xf32, #tpu.memory_space<vmem>>, vector<32x16xf32>
    %cst = arith.constant dense<0.000000e+00> : vector<8x16xf32>
    %4 = tpu.matmul %2, %3, %cst {dimension_numbers = #tpu.dot_dimension_numbers<[1], [0], [0], [1], [0, 0, 1, 1], [], []>} : vector<8x32xf32>, vector<32x16xf32>, vector<8x16xf32> -> vector<8x16xf32>
    %c0_5 = arith.constant 0 : index
    %c0_6 = arith.constant 0 : index
    %5 = vector.load %arg5[%c0_5, %c0_6] : memref<1x16xf32, #tpu.memory_space<vmem>>, vector<1x16xf32>
    %6 = vector.broadcast %5 : vector<1x16xf32> to vector<8x16xf32>
    %7 = arith.addf %4, %6 : vector<8x16xf32>
    %c0_7 = arith.constant 0 : index
    %c0_8 = arith.constant 0 : index
    %8 = vector.load %arg6[%c0_7, %c0_8] : memref<8x16xf32, #tpu.memory_space<vmem>>, vector<8x16xf32>
    tpu.vector_store %arg6[%c0_7, %c0_8], %7 {strides = array<i32>} : memref<8x16xf32, #tpu.memory_space<vmem>>, vector<8x16xf32>,
    return
  }
  func.func @transform_0(%arg0: i32, %arg1: i32) -> (i32, i32) {
    %c0_i32 = arith.constant 0 : i32
    %c0_i32_0 = arith.constant 0 : i32
    return %arg0, %c0_i32 : i32, i32
  }
  func.func @transform_1(%arg0: i32, %arg1: i32) -> (i32, i32) {
    %c0_i32 = arith.constant 0 : i32
    %c0_i32_0 = arith.constant 0 : i32
    return %arg0, %c0_i32 : i32, i32
  }
  func.func @transform_2(%arg0: i32, %arg1: i32) -> (i32, i32) {
    %c0_i32 = arith.constant 0 : i32
    %c0_i32_0 = arith.constant 0 : i32
    %c0_i32_1 = arith.constant 0 : i32
    return %c0_i32, %c0_i32_0 : i32, i32
  }
  func.func @transform_3(%arg0: i32, %arg1: i32) -> (i32, i32) {
    %c0_i32 = arith.constant 0 : i32
    %c0_i32_0 = arith.constant 0 : i32
    %c0_i32_1 = arith.constant 0 : i32
    return %c0_i32, %c0_i32_0 : i32, i32
  }
  func.func @transform_4(%arg0: i32, %arg1: i32) -> (i32, i32) {
    %c0_i32 = arith.constant 0 : i32
    return %arg0, %arg1 : i32, i32
  }
}

</mosaic_0001>

<bundles_post_ra>
// kernel: tpu_custom_call.1
= control target key start
LH: loop header
LB: loop body
LE: loop exit
PB: predicated region body
PF: predicated region fallthrough
CT: control target
= control target key end

     0   :  { %v174_v3 = vmov 0.0|0.0   ;;  %vm175_vm0 = vmmov 0   ;;  %v176_v6 = vmov 0.0   ;;  %s236_s0 = inlined_call_operand.vmem [shape: f32[8,32], index: 0, kind: input, shape index: {}]   ;;  %s237_s1 = inlined_call_operand.vmem [shape: f32[8,32], index: 1, kind: input, shape index: {}]   ;;  %s238_s2 = inlined_call_operand.vmem [shape: f32[32,16], index: 2, kind: input, shape index: {}]   ;;  %s239_s3 = inlined_call_operand.vmem [shape: f32[1,16], index: 3, kind: input, shape index: {}]   ;;  %s240_s4 = inlined_call_operand.hbm [shape: f32[8,16], index: 4, kind: output, shape index: {}]  }
   0x1   :  { %v21_v0 = vld [vmem:[%s238_s2] sm:$0xff]  ;;  %v22_v1 = vld [vmem:[%s238_s2 + $0x8] sm:$0xff]  ;;  %v23_v2 = vld [vmem:[%s238_s2 + $0x10] sm:$0xff]  ;;  %140 = vmatprep.subr.bf16.mxu0 %v174_v3  ;;  %137 = vmatprep.mubr.msk.f32.mxu0 %vm175_vm0, %v176_v6 }
   0x2   :  { %v141_v4 = vpack.c.bf16 %v22_v1, %v21_v0  ;;  %v24_v5 = vld [vmem:[%s238_s2 + $0x18] sm:$0xff] }
   0x3   :  { %9 = vsyncpa [#allocation3], 0  ;;  %v144_v7 = vpack.c.bf16 %v24_v5, %v23_v2  ;;  %v18_v8 = vld [vmem:[%s236_s0] sm:$0xff]  ;;  %vm32_vm1 = vcmask 261120   ;;  %s177_s28 = smov [#allocation2]   ;;  %vm106_vm2 = vcmask 130048  }
   0x4   :  { %142 = vmatpush3.bf16.msra.mxu0 %v141_v4  ;;  %v19_v9 = vld [vmem:[%s237_s1] sm:$0xff]  ;;  %s114_s29 = sshll.u32 %s177_s28, 4  ;;  %s115_s29 = int_to_ptr.vmem [resolvable:$true] %s114_s29 }
   0x5   :  { %143 = vmatprep.subr.bf16.mxu0 %v174_v3  ;;  %v20_v10 = vmul.f32 %v19_v9, %v18_v8  ;;  %v122_v11 = vld [vmem:[%s239_s3] ss:$0 sm:$0xff]  ;;  %s150_s0 = scalar_lea.vmem %s115_s29, 128  ;;  %p155_p1 = scmp.lt.s32.totalorder %s115_s29, %s115_s29 }
   0x6   :  { %p151_p0 = scmp.ne.s32.totalorder %s115_s29, %s150_s0  ;;  %p156_p2 = scmp.lt.s32.totalorder %s150_s0, %s150_s0 }
   0x8   :  { %145 = vmatpush3.bf16.msra.mxu0 %v144_v7  ;;  %p157_p3 = por %p156_p2, %p155_p1 }
   0xa   :  { %p158_p4 = pnand %p157_p3, %p151_p0 }
   0xb   :  { %138 = vmatmul.mubr.msk.f32.vlgmr.msra.gmra.mrb[0].mxu0 %vm32_vm1, %v20_v10 }
  0xde   :  { %v102_v12 = vpop.f32.mrb[0].mxu0 }
  0xdf   :  { %v103_v13 = vadd.f32 %v122_v11, %v102_v12  ;;  %v139_v14 = vpop.f32.mrb[1].mxu0 }
  0xe1   :  { %107 = vst.msk [vmem:[#allocation2] sm:$0xff] %vm106_vm2, %v103_v13 }
  0xe2   :  { %161 = shalt.err (!%p158_p4)
}
  0xe3   :  { %s162_s5 = scalar_lea.hbm %s240_s4, 128 }
  0xe4   :  { %p163_p5 = scmp.ne.s32.totalorder %s240_s4, %s162_s5  ;;  %p166_p6 = scmp.lt.u32.totalorder %s162_s5, %s240_s4 }
  0xe6   :  { %p168_p7 = pnand %p166_p6, %p163_p5 }
  0xe8   :  { %171 = shalt.err (!%p168_p7)
}
  0xe9   :  { %117 = dma.vmem_to_hbm [thread:$0]  %s115_s29, 128, %s240_s4, [#allocation3]  }
  0xea   :  { %172 = dma.done.wait [#allocation3], 128  }
  0xeb   :  { %173 = vsyncadd [#allocation3], 4294967168 }
  0xec   :  { %121 = vsyncpa [#allocation3], 1 }

</bundles_post_ra>
